<compile_context>
chip_gen: v7x
topology: tpu7x:2x2x1
jax: 0.10.0
libtpu: 0.0.40
codegen_flags: <defaults>
</compile_context>

<pallas_src>
import jax
import jax.numpy as jnp
from jax import lax
from jax.experimental import pallas as pl
from jax.experimental.pallas import tpu as pltpu


def _round_up(x: int, m: int) -> int:
    return (x + m - 1) // m * m


def poly_attention_kernel(emb_ref, bmean_ref, w_ref, codes_ref, out_ref):
    # emb_ref:   (BB, L, D)  input dtype (f32/bf16) -- cast to bf16 in-kernel
    # bmean_ref: (BB, L)     f32   precomputed bias.mean(dim=2)
    # w_ref:     (D, C)      bf16  linear weight (pre-transposed)
    # codes_ref: (K, C)      bf16  context codes
    # out_ref:   (BB, K, D)        poly representations
    bb, L, D = emb_ref.shape
    K = codes_ref.shape[0]

    emb = emb_ref[...].astype(jnp.bfloat16)          # VPU cast in VMEM (~free)
    emb2 = emb.reshape(bb * L, D)                    # leading-dim merge: layout no-op

    # proj = tanh(embeddings @ W): bf16 GEMM, f32 accumulate, f32 tanh (EUP).
    proj = jnp.tanh(
        jnp.dot(emb2, w_ref[...], preferred_element_type=jnp.float32)
    ).astype(jnp.bfloat16)                           # (BB*L, C)  f32 proj not kept live

    # scores = proj @ codes^T (+ bias mean); contraction on C for both operands,
    # so no transposed copy of the codes is materialized.
    scores = jnp.einsum(
        "mc,kc->mk", proj, codes_ref[...],
        preferred_element_type=jnp.float32,
    ).reshape(bb, L, K)                              # (BB, L, K) f32
    scores = scores + bmean_ref[...].reshape(bb, L, 1)

    # Softmax over the history axis L (axis=1); keeping the (BB, L, K)
    # orientation avoids the explicit permute(0, 2, 1) of the reference.
    m = jnp.max(scores, axis=1, keepdims=True)
    e = jnp.exp(scores - m)
    denom = jnp.sum(e, axis=1, keepdims=True)
    weights = (e * pl.reciprocal(denom, approx=True)).astype(jnp.bfloat16)

    # poly_repr[b] = weights[b]^T @ emb[b]: batched MXU matmul contracting L.
    out = lax.dot_general(
        weights, emb,
        dimension_numbers=(((1,), (1,)), ((0,), (0,))),
        preferred_element_type=jnp.float32,
    )                                                # (BB, K, D) f32
    out_ref[...] = out.astype(out_ref.dtype)


def _vmem_capacity_bytes() -> int:
    try:
        info = pltpu.get_tpu_info()
        cap = getattr(info, "vmem_capacity_bytes", None)
        if cap:
            return int(cap)
    except Exception:
        pass
    return 64 * 1024 * 1024  # conservative fallback: v7x per-TensorCore VMEM


def _per_batch_vmem_bytes(L, D, C, K, emb_isz, out_isz) -> int:
    """VMEM bytes per batch element (lane/sublane-padded), incl. double buffers."""
    lane, sub = 128, 8
    Lr, Kr = _round_up(L, sub), _round_up(K, sub)
    Dl, Cl, Kl, Ll = (_round_up(x, lane) for x in (D, C, K, L))
    b = 0
    b += 2 * Lr * Dl * emb_isz       # embeddings input tile, double-buffered
    b += 2 * Ll * 4                  # bias-mean rows, double-buffered
    b += 2 * Kr * Dl * out_isz       # output tile, double-buffered
    b += Lr * Dl * 2                 # bf16 embeddings copy
    b += Lr * Cl * (4 + 2)           # f32 tanh output + bf16 proj
    b += 3 * Lr * Kl * 4             # scores / exp / normalized weights (f32)
    b += Lr * Kl * 2                 # bf16 weights
    b += Kr * Dl * 4                 # f32 matmul result before store
    return int(b * 1.5)              # headroom for compiler temporaries / spills


def poly_attention(embeddings, bias, w_t, context_codes, *, block_b=None):
    """Poly attention forward.

    embeddings:    (B, L, D)
    bias:          (B, L, Nc) or None
    w_t:           (D, C)   nn.Linear weight, already transposed
    context_codes: (K, C)
    returns:       (B, K, D)

    The attn_mask argument of the PyTorch module is unused by its forward(),
    so it is not an input here.
    """
    B, L, D = embeddings.shape
    K, C = context_codes.shape
    out_dtype = embeddings.dtype
    emb_isz = jnp.dtype(embeddings.dtype).itemsize
    out_isz = jnp.dtype(out_dtype).itemsize

    # Per-generation VMEM budget: ~42 MiB tile budget / 48 MiB limit on v7x
    # (64 MiB physical); ~83 MiB / 96 MiB on v5e/v6e (128 MiB physical).
    vmem_cap = _vmem_capacity_bytes()
    vmem_budget = int(vmem_cap * 0.65)
    vmem_limit = min(int(vmem_cap * 0.75), 100 * 1024 * 1024)

    if block_b is None:
        per_b = _per_batch_vmem_bytes(L, D, C, K, emb_isz, out_isz)
        block_b = max(1, vmem_budget // per_b)
        if B >= 16:
            # keep >= 2 grid steps so the "parallel" axis feeds both v7x cores
            block_b = min(block_b, max(8, (B // 2) // 8 * 8))

    if block_b >= B:
        block_b, B_pad = B, B
    else:
        # multi-step grid: sublane-align the (block_b, L) bias block
        block_b = max(8, (block_b // 8) * 8)
        if block_b >= B:
            block_b, B_pad = B, B
        else:
            B_pad = _round_up(B, block_b)
    nb = B_pad // block_b

    # Precompute bias.mean(dim=2) as a 2-D (B, L) tensor (8x less bias HBM
    # traffic than raw bias, no lane-padded (...,L,1) tile in VMEM).
    if bias is None:
        bmean = jnp.zeros((B, L), jnp.float32)
    else:
        bmean = jnp.mean(bias.astype(jnp.float32), axis=2)

    if B_pad > B:
        emb_in = jnp.pad(embeddings, ((0, B_pad - B), (0, 0), (0, 0)))
        bmean = jnp.pad(bmean, ((0, B_pad - B), (0, 0)))
    else:
        emb_in = embeddings  # no pad / no cast pass over the big tensor

    w_bf = w_t.astype(jnp.bfloat16)                  # tiny: (D, C)
    codes_bf = context_codes.astype(jnp.bfloat16)    # tiny: (K, C)

    cost = pl.CostEstimate(
        flops=2 * B_pad * L * (D * C + C * K + K * D),
        transcendentals=B_pad * L * (C + K),
        bytes_accessed=(B_pad * L * D * emb_isz + B_pad * L * 4
                        + D * C * 2 + K * C * 2 + B_pad * K * D * out_isz),
    )

    out = pl.pallas_call(
        poly_attention_kernel,
        out_shape=jax.ShapeDtypeStruct((B_pad, K, D), out_dtype),
        grid=(nb,),
        in_specs=[
            pl.BlockSpec((block_b, L, D), lambda i: (i, 0, 0)),
            pl.BlockSpec((block_b, L), lambda i: (i, 0)),
            pl.BlockSpec((D, C), lambda i: (0, 0)),   # resident across steps
            pl.BlockSpec((K, C), lambda i: (0, 0)),   # resident across steps
        ],
        out_specs=pl.BlockSpec((block_b, K, D), lambda i: (i, 0, 0)),
        compiler_params=pltpu.CompilerParams(
            dimension_semantics=("parallel",),
            vmem_limit_bytes=vmem_limit,
        ),
        cost_estimate=cost,
    )(emb_in, bmean, w_bf, codes_bf)

    return out[:B] if B_pad > B else out


def poly_attention_ref(embeddings, bias, w_t, context_codes):
    """Pure-JAX f32 reference mirroring the PyTorch forward."""
    proj = jnp.tanh(jnp.einsum("bld,dc->blc", embeddings, w_t))
    logits = jnp.einsum("blc,kc->blk", proj, context_codes)
    if bias is not None:
        logits = logits + jnp.mean(bias, axis=2, keepdims=True)
    weights = jax.nn.softmax(jnp.transpose(logits, (0, 2, 1)), axis=2)  # (B,K,L)
    return jnp.einsum("bkl,bld->bkd", weights, embeddings)


if __name__ == "__main__":
    # Small shapes consistent with the module:
    #   embed_size = 32, context_code_dim = 32, num_context_codes = 16
    #   batch = 2, his_length = 16, num_candidates = 8
    B, L, D = 2, 16, 32
    C, K, Nc = 32, 16, 8

    key = jax.random.PRNGKey(0)
    k_emb, k_bias, k_w, k_codes = jax.random.split(key, 4)

    embeddings = jax.random.normal(k_emb, (B, L, D), dtype=jnp.float32)
    bias = jax.random.normal(k_bias, (B, L, Nc), dtype=jnp.float32)

    # nn.Linear(embed_size, context_code_dim, bias=False): weight is (C, D),
    # applied as x @ weight.T.  Deterministic init; pass the transpose (D, C).
    lin_bound = 1.0 / jnp.sqrt(jnp.float32(D))
    linear_weight = jax.random.uniform(k_w, (C, D), dtype=jnp.float32,
                                       minval=-lin_bound, maxval=lin_bound)
    w_t = linear_weight.T  # (D, C)

    # context_codes: xavier_uniform with gain = calculate_gain('tanh') = 5/3
    gain = 5.0 / 3.0
    xav_bound = gain * jnp.sqrt(6.0 / (K + C))
    context_codes = jax.random.uniform(k_codes, (K, C), dtype=jnp.float32,
                                       minval=-xav_bound, maxval=xav_bound)

    out = poly_attention(embeddings, bias, w_t, context_codes)
    out = jax.block_until_ready(out)

    ref = poly_attention_ref(embeddings, bias, w_t, context_codes)
    assert out.shape == (B, K, D)
    # bf16 MXU operands + approx reciprocal => looser tolerance than pure f32.
    max_err = float(jnp.max(jnp.abs(out - ref)))
    assert max_err < 7.5e-2, f"mismatch vs reference (max abs err={max_err})"

    print("KERNEL_OK")
</pallas_src>

<mosaic_0001>
module attributes {stable_mosaic.version = 11 : i64} {
  func.func @poly_attention_kernel(%arg0: i32, %arg1: memref<2x16x32xf32, #tpu.memory_space<vmem>>, %arg2: memref<2x16xf32, #tpu.memory_space<vmem>>, %arg3: memref<32x32xbf16, #tpu.memory_space<vmem>>, %arg4: memref<16x32xbf16, #tpu.memory_space<vmem>>, %arg5: memref<2x16x32xf32, #tpu.memory_space<vmem>>) attributes {dimension_semantics = [#tpu.dimension_semantics<parallel>], iteration_bounds = array<i64: 1>, scalar_prefetch = 0 : i64, scratch_operands = 0 : i64, tpu.core_type = #tpu.core_type<tc>, window_params = [{transform_indices = @transform_0, window_bounds = array<i64: 2, 16, 32>}, {transform_indices = @transform_1, window_bounds = array<i64: 2, 16>}, {pipeline_mode = #tpu.pipeline_mode<synchronous>, transform_indices = @transform_2, window_bounds = array<i64: 32, 32>}, {pipeline_mode = #tpu.pipeline_mode<synchronous>, transform_indices = @transform_3, window_bounds = array<i64: 16, 32>}, {transform_indices = @transform_4, window_bounds = array<i64: 2, 16, 32>}]} {
    %c0 = arith.constant 0 : index
    %c0_0 = arith.constant 0 : index
    %c0_1 = arith.constant 0 : index
    %0 = vector.load %arg1[%c0, %c0_0, %c0_1] : memref<2x16x32xf32, #tpu.memory_space<vmem>>, vector<2x16x32xf32>
    %1 = arith.truncf %0 : vector<2x16x32xf32> to vector<2x16x32xbf16>
    %2 = vector.shape_cast %1 : vector<2x16x32xbf16> to vector<32x32xbf16>
    %c0_2 = arith.constant 0 : index
    %c0_3 = arith.constant 0 : index
    %3 = vector.load %arg3[%c0_2, %c0_3] : memref<32x32xbf16, #tpu.memory_space<vmem>>, vector<32x32xbf16>
    %cst = arith.constant dense<0.000000e+00> : vector<32x32xf32>
    %4 = tpu.matmul %2, %3, %cst {dimension_numbers = #tpu.dot_dimension_numbers<[1], [0], [0], [1], [0, 0, 1, 1], [], []>} : vector<32x32xbf16>, vector<32x32xbf16>, vector<32x32xf32> -> vector<32x32xf32>
    %5 = math.tanh %4 : vector<32x32xf32>
    %6 = arith.truncf %5 : vector<32x32xf32> to vector<32x32xbf16>
    %c0_4 = arith.constant 0 : index
    %c0_5 = arith.constant 0 : index
    %7 = vector.load %arg4[%c0_4, %c0_5] : memref<16x32xbf16, #tpu.memory_space<vmem>>, vector<16x32xbf16>
    "tpu.trace_start"() <{level = 10 : i32, message = "mc,kc->mk"}> : () -> ()
    %cst_6 = arith.constant dense<0.000000e+00> : vector<32x16xf32>
    %8 = tpu.matmul %6, %7, %cst_6 {dimension_numbers = #tpu.dot_dimension_numbers<[1], [1], [0], [0], [0, 0, 1, 0], [], []>} : vector<32x32xbf16>, vector<16x32xbf16>, vector<32x16xf32> -> vector<32x16xf32>
    "tpu.trace_stop"() : () -> ()
    %9 = vector.shape_cast %8 : vector<32x16xf32> to vector<2x16x16xf32>
    %c0_7 = arith.constant 0 : index
    %c0_8 = arith.constant 0 : index
    %10 = vector.load %arg2[%c0_7, %c0_8] : memref<2x16xf32, #tpu.memory_space<vmem>>, vector<2x16xf32>
    %11 = vector.shape_cast %10 : vector<2x16xf32> to vector<2x16x1xf32>
    %12 = vector.broadcast %11 : vector<2x16x1xf32> to vector<2x16x16xf32>
    %13 = arith.addf %9, %12 : vector<2x16x16xf32>
    %cst_9 = arith.constant dense<0xFF800000> : vector<2x16xf32>
    %14 = vector.multi_reduction <maximumf>, %13, %cst_9 [1] : vector<2x16x16xf32> to vector<2x16xf32>
    %15 = vector.shape_cast %14 : vector<2x16xf32> to vector<2x1x16xf32>
    %16 = vector.broadcast %15 : vector<2x1x16xf32> to vector<2x16x16xf32>
    %17 = arith.subf %13, %16 : vector<2x16x16xf32>
    %18 = math.exp %17 : vector<2x16x16xf32>
    %cst_10 = arith.constant dense<0.000000e+00> : vector<2x16xf32>
    %19 = vector.multi_reduction <add>, %18, %cst_10 [1] : vector<2x16x16xf32> to vector<2x16xf32>
    %20 = vector.shape_cast %19 : vector<2x16xf32> to vector<2x1x16xf32>
    %21 = tpu.reciprocal %20 {approx = true} : vector<2x1x16xf32> -> vector<2x1x16xf32>
    %22 = vector.broadcast %21 : vector<2x1x16xf32> to vector<2x16x16xf32>
    %23 = arith.mulf %18, %22 : vector<2x16x16xf32>
    %24 = arith.truncf %23 : vector<2x16x16xf32> to vector<2x16x16xbf16>
    %cst_11 = arith.constant dense<0.000000e+00> : vector<2x16x32xf32>
    %25 = tpu.matmul %24, %1, %cst_11 {dimension_numbers = #tpu.dot_dimension_numbers<[1], [1], [2], [2], [0, 0, 0, 2, 1, 2], [0], [0]>} : vector<2x16x16xbf16>, vector<2x16x32xbf16>, vector<2x16x32xf32> -> vector<2x16x32xf32>
    %c0_12 = arith.constant 0 : index
    %c0_13 = arith.constant 0 : index
    %c0_14 = arith.constant 0 : index
    %26 = vector.load %arg5[%c0_12, %c0_13, %c0_14] : memref<2x16x32xf32, #tpu.memory_space<vmem>>, vector<2x16x32xf32>
    tpu.vector_store %arg5[%c0_12, %c0_13, %c0_14], %25 {strides = array<i32>} : memref<2x16x32xf32, #tpu.memory_space<vmem>>, vector<2x16x32xf32>,
    return
  }
  func.func @transform_0(%arg0: i32) -> (i32, i32, i32) {
    %c0_i32 = arith.constant 0 : i32
    %c0_i32_0 = arith.constant 0 : i32
    %c0_i32_1 = arith.constant 0 : i32
    return %arg0, %c0_i32, %c0_i32_0 : i32, i32, i32
  }
  func.func @transform_1(%arg0: i32) -> (i32, i32) {
    %c0_i32 = arith.constant 0 : i32
    %c0_i32_0 = arith.constant 0 : i32
    return %arg0, %c0_i32 : i32, i32
  }
  func.func @transform_2(%arg0: i32) -> (i32, i32) {
    %c0_i32 = arith.constant 0 : i32
    %c0_i32_0 = arith.constant 0 : i32
    %c0_i32_1 = arith.constant 0 : i32
    return %c0_i32, %c0_i32_0 : i32, i32
  }
  func.func @transform_3(%arg0: i32) -> (i32, i32) {
    %c0_i32 = arith.constant 0 : i32
    %c0_i32_0 = arith.constant 0 : i32
    %c0_i32_1 = arith.constant 0 : i32
    return %c0_i32, %c0_i32_0 : i32, i32
  }
  func.func @transform_4(%arg0: i32) -> (i32, i32, i32) {
    %c0_i32 = arith.constant 0 : i32
    %c0_i32_0 = arith.constant 0 : i32
    %c0_i32_1 = arith.constant 0 : i32
    return %arg0, %c0_i32, %c0_i32_0 : i32, i32, i32
  }
}

</mosaic_0001>

<bundles_post_ra>
// kernel: tpu_custom_call.1
= control target key start
LH: loop header
LB: loop body
LE: loop exit
PB: predicated region body
PF: predicated region fallthrough
CT: control target
= control target key end

     0   :  { %9 = vsyncpa [#allocation3], 0  ;;  %s676_s0 = inlined_call_operand.hbm [shape: f32[2,16,32], index: 0, kind: input, shape index: {}]   ;;  %s677_s1 = inlined_call_operand.vmem [shape: f32[2,16], index: 1, kind: input, shape index: {}]   ;;  %s678_s2 = inlined_call_operand.hbm [shape: bf16[32,32], index: 2, kind: input, shape index: {}]   ;;  %s679_s3 = inlined_call_operand.vmem [shape: bf16[16,32], index: 3, kind: input, shape index: {}]   ;;  %s680_s4 = inlined_call_operand.hbm [shape: f32[2,16,32], index: 4, kind: output, shape index: {}]  }
   0x1   :  { %10 = vsyncpa [#allocation6], 0 }
   0x2   :  { %11 = vsyncpa [#allocation4], 0  ;;  %s574_s15 = smov [#allocation2]   ;;  %s502_s19 = scalar_lea.hbm %s676_s0, 512 }
   0x3   :  { %s17_s16 = sshll.u32 %s574_s15, 4  ;;  %p503_p0 = scmp.ne.s32.totalorder %s676_s0, %s502_s19  ;;  %s18_s16 = int_to_ptr.vmem [resolvable:$true] %s17_s16 }
   0x4   :  { %p506_p1 = scmp.lt.u32.totalorder %s502_s19, %s676_s0 }
   0x6   :  { %p508_p2 = pnand %p506_p1, %p503_p0 }
   0x8   :  { %511 = shalt.err (!%p508_p2)
}
   0x9   :  { %s512_s24 = scalar_lea.vmem %s18_s16, 512  ;;  %p517_p4 = scmp.lt.s32.totalorder %s18_s16, %s18_s16 }
   0xa   :  { %p513_p3 = scmp.ne.s32.totalorder %s18_s16, %s512_s24  ;;  %p518_p5 = scmp.lt.s32.totalorder %s512_s24, %s512_s24 }
   0xc   :  { %p519_p6 = por %p518_p5, %p517_p4 }
   0xe   :  { %p520_p7 = pnand %p519_p6, %p513_p3 }
  0x10   :  { %523 = shalt.err (!%p520_p7)
}
  0x11   :  { %s575_s25 = smov 128   ;;  %s576_s26 = smov 8  }
  0x12   :  { %23 = dma.hbm_to_vmem [thread:$0]  %s676_s0, 512, %s18_s16, [#allocation3], %s575_s25, %s575_s25, %s576_s26  }
  0x13   :  { %s577_s29 = smov [#allocation5]   ;;  %s524_s7 = scalar_lea.hbm %s678_s2, 256 }
  0x14   :  { %s31_s30 = sshll.u32 %s577_s29, 4  ;;  %p525_p8 = scmp.ne.s32.totalorder %s678_s2, %s524_s7  ;;  %s32_s30 = int_to_ptr.vmem [resolvable:$true] %s31_s30 }
  0x15   :  { %p528_p9 = scmp.lt.u32.totalorder %s524_s7, %s678_s2 }
  0x17   :  { %p530_p10 = pnand %p528_p9, %p525_p8 }
  0x19   :  { %533 = shalt.err (!%p530_p10)
}
  0x1a   :  { %s534_s12 = scalar_lea.vmem %s32_s30, 256  ;;  %p539_p12 = scmp.lt.s32.totalorder %s32_s30, %s32_s30 }
  0x1b   :  { %p535_p11 = scmp.ne.s32.totalorder %s32_s30, %s534_s12  ;;  %p540_p13 = scmp.lt.s32.totalorder %s534_s12, %s534_s12 }
  0x1d   :  { %p541_p0 = por %p540_p13, %p539_p12 }
  0x1f   :  { %p542_p1 = pnand %p541_p0, %p535_p11 }
  0x21   :  { %545 = shalt.err (!%p542_p1)
}
  0x22   :  { %s578_s0 = smov 64   ;;  %s579_s13 = smov 4  }
  0x23   :  { %37 = dma.hbm_to_vmem [thread:$0]  %s678_s2, 256, %s32_s30, [#allocation6], %s578_s0, %s578_s0, %s579_s13  }
  0x24   :  { %568 = dma.done.wait [#allocation3], 512  }
  0x25   :  { %569 = vsyncadd [#allocation3], 4294966784 }
  0x26   :  { %570 = dma.done.wait [#allocation6], 256  }
  0x27   :  { %571 = vsyncadd [#allocation6], 4294967040  ;;  %v479_v0 = vld [vmem:[#allocation5] sm:$0xff]   ;;  %v480_v1 = vld [vmem:[#allocation5 + $0x8] sm:$0xff]   ;;  %vm69_vm0 = vcmask 261120   ;;  %v197_v10 = vlaneseq  ;;  %v580_v27 = vmov 0.0  }
  0x28   :  { %442 = vmatprep.subr.bf16.mxu0 %v479_v0  ;;  %v47_v2 = vld [vmem:[#allocation2] sm:$0xff]  ;;  %v48_v3 = vld [vmem:[#allocation2 + $0x8] sm:$0xff]  ;;  %v49_v4 = vld [vmem:[#allocation2 + $0x10] sm:$0xff]  ;;  %vm581_vm1 = vmmov 0   ;;  %vm223_vm2 = vcmask 130048  }
  0x29   :  { %443 = vmatpush3.bf16.msra.mxu0 %v479_v0  ;;  %v51_v5 = vpack.c.bf16 %v48_v3, %v47_v2  ;;  %v50_v6 = vld [vmem:[#allocation2 + $0x18] sm:$0xff]  ;;  %v481_v8 = vld [vmem:[%s679_s3] sm:$0xff]   ;;  %v198_v11 = vshrl.u32 %v197_v10, 7 }
  0x2a   :  { %444 = vmatprep.subr.bf16.mxu0 %v480_v1  ;;  %v52_v7 = vpack.c.bf16 %v50_v6, %v49_v4  ;;  %468 = vmatprep.subr.msk.bf16.mxu1 %vm69_vm0, %v481_v8  ;;  %v145_v9 = vsel %vm69_vm0, %v481_v8, 0  ;;  %v196_v12 = vld [vmem:[%s677_s1] sm:$0x3]  ;;  %s582_s1 = smov [#allocation7]  }
  0x2b   :  { %446 = vmatprep.mubr.msk.bf16.mxu0 %vm69_vm0, %v51_v5  ;;  %451 = vmatpush3.bf16.xpose.msra.mxu1 %v145_v9  ;;  %v210_v13 = vsub.s32 1, %v198_v11  ;;  %v199_v14 = vsub.s32 0, %v198_v11  ;;  %s409_s3 = sshll.u32 %s582_s1, 4  ;;  %s410_s3 = int_to_ptr.vmem [resolvable:$true] %s409_s3 }
  0x2c   :  { %462 = vmatprep.subr.bf16.mxu1 %v580_v27  ;;  %s546_s19 = scalar_lea.vmem %s410_s3, 512  ;;  %p551_p3 = scmp.lt.s32.totalorder %s410_s3, %s410_s3 }
  0x2d   :  { %445 = vmatpush3.bf16.msra.mxu0 %v480_v1  ;;  %v211_v15 = vrot.slane %v196_v12, %v210_v13  ;;  %v200_v16 = vrot.slane %v196_v12, %v199_v14  ;;  %p547_p2 = scmp.ne.s32.totalorder %s410_s3, %s546_s19  ;;  %p552_p4 = scmp.lt.s32.totalorder %s546_s19, %s546_s19 }
  0x2e   :  { %456 = vmatprep.subr.bf16.mxu0 %v580_v27 }
  0x2f   :  { %213 = vbcast.lane.b32.xlu1 %v211_v15, 256  ;;  %202 = vbcast.lane.b32.xlu0 %v200_v16, 256  ;;  %p553_p5 = por %p552_p4, %p551_p3 }
  0x30   :  { %447 = vmatmul.mubr.msk.bf16.vlgmr.msra.gmra.mrb[0].mxu0 %vm69_vm0, %v52_v7 }
  0x31   :  { %457 = vmatpush3.bf16.msra.mxu0 %v51_v5  ;;  %458 = vmatprep.mubr.msk.bf16.mxu0 %vm581_vm1, %v580_v27  ;;  %p554_p6 = pnand %p553_p5, %p547_p2 }
  0x33   :  { %217 = vbcast.lane.b32.xlu1 %v211_v15, 264  ;;  %206 = vbcast.lane.b32.xlu0 %v200_v16, 264 }
  0xa1   :  { %v214_v28 = vpop.permute.xlu1 %213  ;;  %v203_v29 = vpop.permute.xlu0 %202 }
  0xa5   :  { %v218_v31 = vpop.permute.xlu1 %217  ;;  %v207_v34 = vpop.permute.xlu0 %206 }
 0x103   :  { %v448_v17 = vpop.f32.mrb[0].mxu0 }
 0x104   :  { %482 = vtanh.f32 %v448_v17  ;;  %v110_v18 = vpop.f32.mrb[1].mxu0 }
 0x105   :  { %484 = vtanh.f32 %v110_v18  ;;  %v449_v19 = vpop.f32.mrb[2].mxu0 }
 0x106   :  { %486 = vtanh.f32 %v449_v19  ;;  %v113_v20 = vpop.f32.mrb[3].mxu0 }
 0x107   :  { %488 = vtanh.f32 %v113_v20 }
 0x10e   :  { %v483_v21 = vpop.eup %482 }
 0x10f   :  { %v485_v22 = vpop.eup %484 }
 0x110   :  { %v487_v23 = vpop.eup %486 }
 0x111   :  { %v489_v24 = vpop.eup %488  ;;  %v130_v25 = vpack.c.bf16 %v487_v23, %v483_v21 }
 0x112   :  { %v129_v26 = vpack.c.bf16 %v489_v24, %v485_v22 }
 0x114   :  { %452 = vmatprep.mubr.msk.bf16.mxu1 %vm69_vm0, %v129_v26 }
 0x115   :  { %453 = vmatmul.mubr.msk.bf16.vlgmr.msra.gmra.mrb[0].mxu1 %vm69_vm0, %v130_v25 }
 0x116   :  { %463 = vmatpush3.bf16.msra.mxu1 %v52_v7  ;;  %464 = vmatprep.mubr.msk.bf16.mxu1 %vm581_vm1, %v580_v27 }
 0x1e8   :  { %v454_v30 = vpop.f32.mrb[0].mxu1 }
 0x1e9   :  { %v221_v32 = vadd.f32 %v454_v30, %v214_v28  ;;  %v181_v33 = vpop.f32.mrb[1].mxu1 }
 0x1ea   :  { %v219_v35 = vadd.f32 %v203_v29, %v181_v33  ;;  %v455_v36 = vpop.f32.mrb[2].mxu1 }
 0x1eb   :  { %v222_v37 = vadd.f32 %v455_v36, %v218_v31  ;;  %v184_v38 = vpop.f32.mrb[3].mxu1  ;;  %v233_v40 = vsel %vm223_vm2, %v221_v32, -inf }
 0x1ec   :  { %v220_v39 = vadd.f32 %v207_v34, %v184_v38  ;;  %v224_v42 = vsel %vm223_vm2, %v219_v35, -inf }
 0x1ed   :  { %v234_v41 = vsel %vm223_vm2, %v222_v37, -inf }
 0x1ee   :  { %v235_v43 = vmax.f32 %v233_v40, %v234_v41  ;;  %v225_v44 = vsel %vm223_vm2, %v220_v39, -inf }
 0x1ef   :  { %v226_v45 = vmax.f32 %v224_v42, %v225_v44 }
 0x1f0   :  { %v236_v46 = vrot.slane %v235_v43, 4 }
 0x1f1   :  { %v227_v47 = vrot.slane %v226_v45, 4 }
 0x1f2   :  { %v237_v48 = vmax.f32 %v235_v43, %v236_v46 }
 0x1f3   :  { %v228_v49 = vmax.f32 %v226_v45, %v227_v47 }
 0x1f4   :  { %v238_v50 = vrot.slane %v237_v48, 2 }
 0x1f5   :  { %v229_v51 = vrot.slane %v228_v49, 2 }
 0x1f6   :  { %v239_v52 = vmax.f32 %v237_v48, %v238_v50 }
 0x1f7   :  { %v230_v53 = vmax.f32 %v228_v49, %v229_v51 }
 0x1f8   :  { %v240_v54 = vrot.slane %v239_v52, 1 }
 0x1f9   :  { %v231_v55 = vrot.slane %v230_v53, 1 }
 0x1fa   :  { %v241_v56 = vmax.f32 %v239_v52, %v240_v54 }
 0x1fb   :  { %v232_v57 = vmax.f32 %v230_v53, %v231_v55 }
 0x1fc   :  { %v244_v58 = vsub.f32 %v221_v32, %v241_v56  ;;  %v245_v59 = vsub.f32 %v222_v37, %v241_v56 }
 0x1fd   :  { %v242_v60 = vsub.f32 %v219_v35, %v232_v57  ;;  %v243_v61 = vsub.f32 %v220_v39, %v232_v57 }
 0x1fe   :  { %v250_v62 = vmul.f32 1.442695, %v244_v58  ;;  %v252_v63 = vmul.f32 1.442695, %v245_v59 }
 0x1ff   :  { %v246_v0 = vmul.f32 1.442695, %v242_v60  ;;  %v248_v1 = vmul.f32 1.442695, %v243_v61 }
 0x200   :  { %490 = vpow2.f32 %v250_v62 }
 0x201   :  { %492 = vpow2.f32 %v252_v63 }
 0x202   :  { %494 = vpow2.f32 %v246_v0 }
 0x203   :  { %496 = vpow2.f32 %v248_v1 }
 0x20a   :  { %v491_v2 = vpop.eup %490 }
 0x20b   :  { %v493_v3 = vpop.eup %492  ;;  %v263_v4 = vsel %vm223_vm2, %v491_v2, 0.0 }
 0x20c   :  { %v495_v5 = vpop.eup %494  ;;  %v264_v6 = vsel %vm223_vm2, %v493_v3, 0.0 }
 0x20d   :  { %v497_v7 = vpop.eup %496  ;;  %v265_v8 = vadd.f32 %v264_v6, %v263_v4  ;;  %v254_v9 = vsel %vm223_vm2, %v495_v5, 0.0 }
 0x20e   :  { %v255_v10 = vsel %vm223_vm2, %v497_v7, 0.0 }
 0x20f   :  { %v266_v11 = vrot.slane %v265_v8, 4  ;;  %v256_v12 = vadd.f32 %v255_v10, %v254_v9 }
 0x211   :  { %v267_v13 = vadd.f32 %v266_v11, %v265_v8  ;;  %v257_v14 = vrot.slane %v256_v12, 4 }
 0x213   :  { %v258_v15 = vadd.f32 %v257_v14, %v256_v12  ;;  %v268_v16 = vrot.slane %v267_v13, 2 }
 0x215   :  { %v269_v17 = vadd.f32 %v268_v16, %v267_v13  ;;  %v259_v18 = vrot.slane %v258_v15, 2 }
 0x217   :  { %v270_v19 = vrot.slane %v269_v17, 1  ;;  %v260_v20 = vadd.f32 %v259_v18, %v258_v15 }
 0x219   :  { %v271_v21 = vadd.f32 %v270_v19, %v269_v17  ;;  %v261_v22 = vrot.slane %v260_v20, 1 }
 0x21b   :  { %498 = vrcp.f32 %v271_v21  ;;  %v262_v23 = vadd.f32 %v261_v22, %v260_v20 }
 0x21d   :  { %500 = vrcp.f32 %v262_v23 }
 0x225   :  { %v499_v24 = vpop.eup %498 }
 0x226   :  { %v276_v25 = vmul.f32 %v499_v24, %v491_v2  ;;  %v277_v26 = vmul.f32 %v499_v24, %v493_v3 }
 0x227   :  { %v501_v27 = vpop.eup %500 }
 0x228   :  { %v279_v28 = vpack.c.bf16 %v277_v26, %v276_v25  ;;  %v274_v29 = vmul.f32 %v501_v27, %v495_v5  ;;  %v275_v30 = vmul.f32 %v501_v27, %v497_v7 }
 0x22a   :  { %340 = vxpose.xlu1.c.b16.start.end [1/1] (short) (narrow) %v279_v28, 16  ;;  %v278_v31 = vpack.c.bf16 %v275_v30, %v274_v29 }
 0x22c   :  { %280 = vxpose.xlu0.c.b16.start.end [1/1] (short) (narrow) %v278_v31, 16 }
 0x290   :  { %v348_v32 = vpop.trf.xlu1 }
 0x291   :  { %465 = vmatmul.mubr.msk.bf16.vlgmr.msra.gmra.mrb[4].mxu1 %vm223_vm2, %v348_v32 }
 0x292   :  { %v288_v33 = vpop.trf.xlu0 }
 0x293   :  { %459 = vmatmul.mubr.msk.bf16.vlgmr.msra.gmra.mrb[4].mxu0 %vm223_vm2, %v288_v33 }
 0x364   :  { %v393_v34 = vpop.f32.mrb[4].mxu1 }
 0x365   :  { %402 = vst.msk [vmem:[#allocation7 + $0x10] sm:$0xff] %vm69_vm0, %v393_v34  ;;  %v466_v35 = vpop.f32.mrb[5].mxu1 }
 0x366   :  { %v333_v36 = vpop.f32.mrb[4].mxu0  ;;  %v396_v37 = vpop.f32.mrb[6].mxu1 }
 0x367   :  { %400 = vst.msk [vmem:[#allocation7] sm:$0xff] %vm69_vm0, %v333_v36  ;;  %v460_v38 = vpop.f32.mrb[5].mxu0  ;;  %403 = vst.msk [vmem:[#allocation7 + $0x18] sm:$0xff] %vm69_vm0, %v396_v37  ;;  %v467_v39 = vpop.f32.mrb[7].mxu1 }
 0x368   :  { %v336_v40 = vpop.f32.mrb[6].mxu0 }
 0x369   :  { %401 = vst.msk [vmem:[#allocation7 + $0x8] sm:$0xff] %vm69_vm0, %v336_v40  ;;  %v461_v41 = vpop.f32.mrb[7].mxu0 }
 0x36a   :  { %557 = shalt.err (!%p554_p6)
}
 0x36b   :  { %s558_s22 = scalar_lea.hbm %s680_s4, 512 }
 0x36c   :  { %p559_p7 = scmp.ne.s32.totalorder %s680_s4, %s558_s22  ;;  %p562_p8 = scmp.lt.u32.totalorder %s558_s22, %s680_s4 }
 0x36e   :  { %p564_p9 = pnand %p562_p8, %p559_p7 }
 0x370   :  { %567 = shalt.err (!%p564_p9)
}
 0x371   :  { %415 = dma.vmem_to_hbm [thread:$0]  %s410_s3, 512, %s680_s4, [#allocation4], %s575_s25, %s575_s25, %s576_s26  }
 0x372   :  { %572 = dma.done.wait [#allocation4], 512  }
 0x373   :  { %573 = vsyncadd [#allocation4], 4294966784 }
 0x374   :  { %419 = vsyncpa [#allocation3], 1 }
 0x375   :  { %420 = vsyncpa [#allocation6], 1 }
 0x376   :  { %421 = vsyncpa [#allocation4], 1 }

</bundles_post_ra>
